<compile_context>
chip_gen: v7x
topology: tpu7x:2x2x1
jax: 0.10.0
libtpu: 0.0.40
codegen_flags: <defaults>
</compile_context>

<pallas_src>
import jax
import jax.numpy as jnp
from jax.experimental import pallas as pl
from jax.experimental.pallas import tpu as pltpu


def _round_up(x, m):
    return ((x + m - 1) // m) * m


def _mse_kernel(yt_ref, yp_ref, num_ref, den_ref, num_acc, den_acc):
    k = pl.program_id(1)

    # init accumulators on the first spatial chunk of each row block
    @pl.when(k == 0)
    def _():
        num_acc[...] = jnp.zeros_like(num_acc)
        den_acc[...] = jnp.zeros_like(den_acc)

    yt = yt_ref[...].astype(jnp.float32)
    yp = yp_ref[...].astype(jnp.float32)

    # mask = 1 where both inputs are >= 0, else 0 (matches torch.where(x<0,0,1) & ...)
    mask = jnp.logical_and(yt >= 0.0, yp >= 0.0).astype(jnp.float32)
    diff = yt - yp

    # pure-VALU elementwise accumulation; no per-step cross-lane reduction
    num_acc[...] += diff * diff * mask
    den_acc[...] += mask

    # finalize: one cross-lane reduce per row block, written once
    @pl.when(k == pl.num_programs(1) - 1)
    def _():
        num_ref[...] = jnp.sum(num_acc[...], axis=-1, keepdims=True)
        den_ref[...] = jnp.sum(den_acc[...], axis=-1, keepdims=True)


def masked_mse(y_true, y_pred):
    """JAX/Pallas equivalent of MSE().forward(y_true, y_pred)."""
    assert y_true.shape == y_pred.shape and y_true.ndim == 5
    n, c, d, h, w = y_true.shape
    cols = c * d * h * w

    sub = 8                      # sublane fill: split each batch row into 8 sub-rows
    rb = 8                       # row-block (sublane) size per grid step
    rows_eff = n * sub

    itemsize = y_true.dtype.itemsize
    # VMEM budget: 2 inputs x 2 pipeline buffers x (rb, ts) x itemsize
    #            + 2 f32 accumulators x (rb, ts)
    budget = 24 * 1024 * 1024
    per_lane = rb * (4 * itemsize + 2 * 4)
    ts = (budget // per_lane) // 128 * 128
    ts = max(128, min(ts, 32 * 1024))                       # cap the tile
    ts = min(ts, _round_up(-(-cols // sub), 128))           # don't exceed the data

    cols_pad = _round_up(cols, sub * ts)
    cols_sub = cols_pad // sub
    grid_k = cols_sub // ts

    yt2 = y_true.reshape(n, cols)
    yp2 = y_pred.reshape(n, cols)
    pad = cols_pad - cols
    if pad:
        # pad with -1 => mask == 0 at padded positions => contributes nothing
        yt2 = jnp.pad(yt2, ((0, 0), (0, pad)), constant_values=-1.0)
        yp2 = jnp.pad(yp2, ((0, 0), (0, pad)), constant_values=-1.0)
    yt2 = yt2.reshape(rows_eff, cols_sub)
    yp2 = yp2.reshape(rows_eff, cols_sub)

    num, den = pl.pallas_call(
        _mse_kernel,
        out_shape=(
            jax.ShapeDtypeStruct((rows_eff, 1), jnp.float32),
            jax.ShapeDtypeStruct((rows_eff, 1), jnp.float32),
        ),
        grid_spec=pltpu.PrefetchScalarGridSpec(
            num_scalar_prefetch=0,
            grid=(rows_eff // rb, grid_k),
            in_specs=[
                pl.BlockSpec((rb, ts), lambda i, k: (i, k)),
                pl.BlockSpec((rb, ts), lambda i, k: (i, k)),
            ],
            out_specs=[
                pl.BlockSpec((rb, 1), lambda i, k: (i, 0)),
                pl.BlockSpec((rb, 1), lambda i, k: (i, 0)),
            ],
            scratch_shapes=[
                pltpu.VMEM((rb, ts), jnp.float32),
                pltpu.VMEM((rb, ts), jnp.float32),
            ],
        ),
        compiler_params=pltpu.CompilerParams(
            dimension_semantics=("parallel", "arbitrary"),
            vmem_limit_bytes=32 * 1024 * 1024,
        ),
        cost_estimate=pl.CostEstimate(
            flops=8 * rows_eff * cols_sub,
            transcendentals=0,
            bytes_accessed=2 * rows_eff * cols_sub * itemsize + 2 * rows_eff * 4,
        ),
    )(yt2, yp2)

    # fold the 8 sub-rows of each batch row, then divide and average (O(N) glue)
    num_row = num.reshape(n, sub).sum(axis=1)
    den_row = den.reshape(n, sub).sum(axis=1)
    return jnp.mean(num_row / (den_row + 1e-5))


def masked_mse_ref(y_true, y_pred):
    """Pure-JAX reference mirroring the PyTorch forward exactly."""
    mask = jnp.logical_and(y_true >= 0.0, y_pred >= 0.0).astype(jnp.float32)
    diff = (y_true - y_pred).astype(jnp.float32)
    num = jnp.sum(diff * diff * mask, axis=(1, 2, 3, 4))
    den = jnp.sum(mask, axis=(1, 2, 3, 4))
    return jnp.mean(num / (den + 1e-5))


if __name__ == "__main__":
    key = jax.random.PRNGKey(0)
    k1, k2 = jax.random.split(key)
    # small 5-D volumes: (N, C, D, H, W); normals give a mix of +/- values
    shape = (2, 4, 8, 8, 8)
    y_true = jax.random.normal(k1, shape, dtype=jnp.float32)
    y_pred = jax.random.normal(k2, shape, dtype=jnp.float32)

    out = masked_mse(y_true, y_pred)
    out = jax.block_until_ready(out)

    ref = masked_mse_ref(y_true, y_pred)
    assert jnp.allclose(out, ref, rtol=1e-5, atol=1e-5), (out, ref)
    print("KERNEL_OK")
</pallas_src>

<mosaic_0001>
module attributes {stable_mosaic.version = 11 : i64} {
  func.func @_mse_kernel(%arg0: i32, %arg1: i32, %arg2: memref<8x256xf32, #tpu.memory_space<vmem>>, %arg3: memref<8x256xf32, #tpu.memory_space<vmem>>, %arg4: memref<8x1xf32, #tpu.memory_space<vmem>>, %arg5: memref<8x1xf32, #tpu.memory_space<vmem>>, %arg6: memref<8x256xf32, #tpu.memory_space<vmem>>, %arg7: memref<8x256xf32, #tpu.memory_space<vmem>>) attributes {dimension_semantics = [#tpu.dimension_semantics<parallel>, #tpu.dimension_semantics<arbitrary>], iteration_bounds = array<i64: 2, 1>, scalar_prefetch = 0 : i64, scratch_operands = 2 : i64, tpu.core_type = #tpu.core_type<tc>, window_params = [{transform_indices = @transform_0, window_bounds = array<i64: 8, 256>}, {transform_indices = @transform_1, window_bounds = array<i64: 8, 256>}, {transform_indices = @transform_2, window_bounds = array<i64: 8, 1>}, {transform_indices = @transform_3, window_bounds = array<i64: 8, 1>}]} {
    %c0_i32 = arith.constant 0 : i32
    %0 = arith.cmpi eq, %arg1, %c0_i32 : i32
    %1 = arith.extui %0 : i1 to i32
    %c0_i32_0 = arith.constant 0 : i32
    %2 = arith.cmpi ne, %1, %c0_i32_0 : i32
    scf.if %2 {
      %cst_15 = arith.constant 0.000000e+00 : f32
      %24 = vector.broadcast %cst_15 : f32 to vector<8x256xf32>
      %c0_16 = arith.constant 0 : index
      %c0_17 = arith.constant 0 : index
      %25 = vector.load %arg6[%c0_16, %c0_17] : memref<8x256xf32, #tpu.memory_space<vmem>>, vector<8x256xf32>
      tpu.vector_store %arg6[%c0_16, %c0_17], %24 {strides = array<i32>} : memref<8x256xf32, #tpu.memory_space<vmem>>, vector<8x256xf32>,
      %cst_18 = arith.constant 0.000000e+00 : f32
      %26 = vector.broadcast %cst_18 : f32 to vector<8x256xf32>
      %c0_19 = arith.constant 0 : index
      %c0_20 = arith.constant 0 : index
      %27 = vector.load %arg7[%c0_19, %c0_20] : memref<8x256xf32, #tpu.memory_space<vmem>>, vector<8x256xf32>
      tpu.vector_store %arg7[%c0_19, %c0_20], %26 {strides = array<i32>} : memref<8x256xf32, #tpu.memory_space<vmem>>, vector<8x256xf32>,
    } else {
    }
    %c0 = arith.constant 0 : index
    %c0_1 = arith.constant 0 : index
    %3 = vector.load %arg2[%c0, %c0_1] : memref<8x256xf32, #tpu.memory_space<vmem>>, vector<8x256xf32>
    %c0_2 = arith.constant 0 : index
    %c0_3 = arith.constant 0 : index
    %4 = vector.load %arg3[%c0_2, %c0_3] : memref<8x256xf32, #tpu.memory_space<vmem>>, vector<8x256xf32>
    %cst = arith.constant 0.000000e+00 : f32
    %5 = vector.broadcast %cst : f32 to vector<8x256xf32>
    %6 = arith.cmpf oge, %3, %5 : vector<8x256xf32>
    %cst_4 = arith.constant 0.000000e+00 : f32
    %7 = vector.broadcast %cst_4 : f32 to vector<8x256xf32>
    %8 = arith.cmpf oge, %4, %7 : vector<8x256xf32>
    %9 = arith.andi %6, %8 : vector<8x256xi1>
    %10 = arith.extui %9 : vector<8x256xi1> to vector<8x256xi32>
    %11 = arith.sitofp %10 : vector<8x256xi32> to vector<8x256xf32>
    %12 = arith.subf %3, %4 : vector<8x256xf32>
    %c0_5 = arith.constant 0 : index
    %c0_6 = arith.constant 0 : index
    %13 = vector.load %arg6[%c0_5, %c0_6] : memref<8x256xf32, #tpu.memory_space<vmem>>, vector<8x256xf32>
    %14 = arith.mulf %12, %12 : vector<8x256xf32>
    %15 = arith.mulf %14, %11 : vector<8x256xf32>
    %16 = arith.addf %13, %15 : vector<8x256xf32>
    %c0_7 = arith.constant 0 : index
    %c0_8 = arith.constant 0 : index
    %17 = vector.load %arg6[%c0_7, %c0_8] : memref<8x256xf32, #tpu.memory_space<vmem>>, vector<8x256xf32>
    tpu.vector_store %arg6[%c0_7, %c0_8], %16 {strides = array<i32>} : memref<8x256xf32, #tpu.memory_space<vmem>>, vector<8x256xf32>,
    %c0_9 = arith.constant 0 : index
    %c0_10 = arith.constant 0 : index
    %18 = vector.load %arg7[%c0_9, %c0_10] : memref<8x256xf32, #tpu.memory_space<vmem>>, vector<8x256xf32>
    %19 = arith.addf %18, %11 : vector<8x256xf32>
    %c0_11 = arith.constant 0 : index
    %c0_12 = arith.constant 0 : index
    %20 = vector.load %arg7[%c0_11, %c0_12] : memref<8x256xf32, #tpu.memory_space<vmem>>, vector<8x256xf32>
    tpu.vector_store %arg7[%c0_11, %c0_12], %19 {strides = array<i32>} : memref<8x256xf32, #tpu.memory_space<vmem>>, vector<8x256xf32>,
    %c0_i32_13 = arith.constant 0 : i32
    %21 = arith.cmpi eq, %arg1, %c0_i32_13 : i32
    %22 = arith.extui %21 : i1 to i32
    %c0_i32_14 = arith.constant 0 : i32
    %23 = arith.cmpi ne, %22, %c0_i32_14 : i32
    scf.if %23 {
      %c0_15 = arith.constant 0 : index
      %c0_16 = arith.constant 0 : index
      %24 = vector.load %arg6[%c0_15, %c0_16] : memref<8x256xf32, #tpu.memory_space<vmem>>, vector<8x256xf32>
      %cst_17 = arith.constant dense<0.000000e+00> : vector<8xf32>
      %25 = vector.multi_reduction <add>, %24, %cst_17 [1] : vector<8x256xf32> to vector<8xf32>
      %26 = vector.shape_cast %25 : vector<8xf32> to vector<8x1xf32>
      %c0_18 = arith.constant 0 : index
      %c0_19 = arith.constant 0 : index
      %27 = vector.load %arg4[%c0_18, %c0_19] : memref<8x1xf32, #tpu.memory_space<vmem>>, vector<8x1xf32>
      tpu.vector_store %arg4[%c0_18, %c0_19], %26 {strides = array<i32>} : memref<8x1xf32, #tpu.memory_space<vmem>>, vector<8x1xf32>,
      %c0_20 = arith.constant 0 : index
      %c0_21 = arith.constant 0 : index
      %28 = vector.load %arg7[%c0_20, %c0_21] : memref<8x256xf32, #tpu.memory_space<vmem>>, vector<8x256xf32>
      %cst_22 = arith.constant dense<0.000000e+00> : vector<8xf32>
      %29 = vector.multi_reduction <add>, %28, %cst_22 [1] : vector<8x256xf32> to vector<8xf32>
      %30 = vector.shape_cast %29 : vector<8xf32> to vector<8x1xf32>
      %c0_23 = arith.constant 0 : index
      %c0_24 = arith.constant 0 : index
      %31 = vector.load %arg5[%c0_23, %c0_24] : memref<8x1xf32, #tpu.memory_space<vmem>>, vector<8x1xf32>
      tpu.vector_store %arg5[%c0_23, %c0_24], %30 {strides = array<i32>} : memref<8x1xf32, #tpu.memory_space<vmem>>, vector<8x1xf32>,
    } else {
    }
    return
  }
  func.func @transform_0(%arg0: i32, %arg1: i32) -> (i32, i32) {
    %c0_i32 = arith.constant 0 : i32
    return %arg0, %arg1 : i32, i32
  }
  func.func @transform_1(%arg0: i32, %arg1: i32) -> (i32, i32) {
    %c0_i32 = arith.constant 0 : i32
    return %arg0, %arg1 : i32, i32
  }
  func.func @transform_2(%arg0: i32, %arg1: i32) -> (i32, i32) {
    %c0_i32 = arith.constant 0 : i32
    %c0_i32_0 = arith.constant 0 : i32
    return %arg0, %c0_i32 : i32, i32
  }
  func.func @transform_3(%arg0: i32, %arg1: i32) -> (i32, i32) {
    %c0_i32 = arith.constant 0 : i32
    %c0_i32_0 = arith.constant 0 : i32
    return %arg0, %c0_i32 : i32, i32
  }
}

</mosaic_0001>

<bundles_post_ra>
// kernel: tpu_custom_call.1
= control target key start
LH: loop header
LB: loop body
LE: loop exit
PB: predicated region body
PF: predicated region fallthrough
CT: control target
= control target key end

     0   :  { %9 = vsyncpa [#allocation5], 0  ;;  %s843_s0 = inlined_call_operand.hbm [shape: f32[16,256], index: 0, kind: input, shape index: {}]   ;;  %s844_s1 = inlined_call_operand.hbm [shape: f32[16,256], index: 1, kind: input, shape index: {}]   ;;  %s845_s2 = inlined_call_operand.vmem [shape: f32[16,1], index: 2, kind: output, shape index: {0}]   ;;  %s846_s3 = inlined_call_operand.vmem [shape: f32[16,1], index: 3, kind: output, shape index: {1}]  }
   0x1   :  { %11 = vsyncpa [#allocation5 + $0x1], 0 }
   0x2   :  { %12 = vsyncpa [#allocation7], 0 }
   0x3   :  { %14 = vsyncpa [#allocation7 + $0x1], 0  ;;  %s668_s12 = smov 0   ;;  %s670_s13 = smov 0  }
   0x4   :  { %s672_s14 = smov 0   ;;  %s674_s15 = smov 0  }
   0x5   :  { %s676_s16 = smov 0   ;;  %s678_s17 = smov 0  }
   0x6 LB: > { %s447_s18 = sadd.s32 4294967295, %s643_s17   ;;  %s32_s19 = sadd.s32 1, %s639_s16  ;;  %s643_s17 = sphi %s678_s17, %s20_s17   ;;  %s639_s16 = sphi %s676_s16, %s860_s16   ;;  %s635_s15 = sphi %s674_s15, %s859_s15   ;;  %s631_s14 = sphi %s672_s14, %s858_s14   ;;  %s627_s13 = sphi %s670_s13, %s857_s13   ;;  %s623_s12 = sphi %s668_s12, %s856_s12  }
   0x7   : > { %p34_p0 = scmp.ge.s32.totalorder %s32_s19, 2  ;;  %s41_s20 = sadd.s32 1, %s631_s14 }
   0x8   : > { %p48_p1 = scmp.ne.s32.totalorder %s631_s14, %s627_s13  ;;  %p49_p2 = scmp.eq.s32.totalorder %s643_s17, 0 }
   0x9   : > { %s862_s19 = smov (%p34_p0, %s32_s19), 0  ;;  %p54_p4 = scmp.ne.s32.totalorder %s627_s13, %s623_s12 }
   0xa   : > { %p704_p3 = por %p49_p2, %p48_p1  ;;  %s36_s22 = ssub.s32 %s639_s16, %s862_s19 }
   0xb   : > { %p55_p5 = scmp.eq.s32.totalorder %s447_s18, 0  ;;  %p39_p6 = scmp.eq.s32.totalorder %s36_s22, 0 }
   0xc   : > { %p479_p8 = scmp.lt.s32.totalorder %s643_s17, 2  ;;  %s720_s25 = sand.u32 1, %s631_s14  }
   0xd   : > { %p711_p7 = por %p55_p5, %p54_p4  ;;  %s466_s26 = sshll.u32 %s639_s16, 8 }
   0xe   : > { %s717_s24 = scalar_select %p39_p6, %s631_s14, %s41_s20  }
   0xf   : > { %s849_s23 = scalar_select %p711_p7, 1, 0 }
  0x10   : > { %s451_s27 = sshll.u32 %s720_s25, 4  ;;  %s729_s30 = scalar_lea.hbm %s843_s0, %s466_s26 }
  0x11   : > { %s162_s4 = scalar_lea.vmem [#allocation4], %s451_s27  ;;  %p735_p9 = pnand %p479_p8, %p704_p3 }
  0x12   : > { %s172_s5 = sshll.u32 %s162_s4, 4  ;;  %s159_s7 = scalar_lea.sflag [#allocation5], %s720_s25  ;;  %s739_s5 = int_to_ptr.vmem [resolvable:$true] %s172_s5 }
  0x13   : > { %s529_s8 = scalar_lea.hbm %s729_s30, 256  ;;  %p531_p13 = pneg %p735_p9 }
  0x14   : > { %p530_p12 = scmp.ne.s32.totalorder %s729_s30, %s529_s8  ;;  %s534_s11 = scalar_lea.hbm %s843_s0, 512 }
  0x15   : > { %p535_p2 = scmp.lt.u32.totalorder %s729_s30, %s843_s0  ;;  %p536_p3 = scmp.lt.u32.totalorder %s534_s11, %s529_s8 }
  0x16   : > { %p532_p0 = pnand %p531_p13, %p530_p12  ;;  %p538_p5 = scmp.lt.u32.totalorder %s529_s8, %s729_s30 }
  0x17   : > { %p537_p4 = por %p536_p3, %p535_p2 }
  0x18   : > { %p533_p1 = pneg %p532_p0 }
  0x19   : > { %p539_p6 = por %p538_p5, %p537_p4 }
  0x1b   : > { %p540_p8 = pnand %p539_p6, %p533_p1 }
  0x1d   : > { %543 = shalt.err (!%p540_p8)
}
  0x1e   : > { %s544_s20 = scalar_lea.vmem %s739_s5, 256  ;;  %s645_s21 = smov [#allocation4]  }
  0x1f   : > { %p545_p12 = scmp.ne.s32.totalorder %s739_s5, %s544_s20  ;;  %s549_s22 = sshll.u32 %s645_s21, 4  ;;  %s550_s22 = int_to_ptr.vmem [resolvable:$false] %s549_s22 }
  0x20   : > { %s551_s28 = scalar_lea.vmem %s550_s22, 512  ;;  %p552_p11 = scmp.lt.s32.totalorder %s739_s5, %s550_s22 }
  0x21   : > { %p547_p0 = pnand %p545_p12, %p531_p13  ;;  %p553_p2 = scmp.lt.s32.totalorder %s551_s28, %s544_s20 }
  0x23   : > { %p548_p10 = pneg %p547_p0  ;;  %p554_p3 = por %p553_p2, %p552_p11 }
  0x25   : > { %p555_p4 = pnand %p554_p3, %p548_p10 }
  0x27   : > { %558 = shalt.err (!%p555_p4)
}
  0x28   : > { %475 = dma.hbm_to_vmem [thread:$0]  (!%p735_p9), %s729_s30, 256, %s739_s5, %s159_s7  }
  0x29   : > { %p851_p1 = scmp.lt.s32.totalorder %s643_s17, 3  ;;  %p852_p5 = scmp.ge.s32.totalorder %s643_s17, 1 }
  0x2a   : > { %s782_s9 = scalar_lea.hbm %s844_s1, %s466_s26  ;;  %s183_s10 = scalar_lea.vmem [#allocation6], %s451_s27 }
  0x2b   : > { %p773_p6 = pnand %p852_p5, %p851_p1  ;;  %s193_s11 = sshll.u32 %s183_s10, 4  ;;  %s194_s11 = int_to_ptr.vmem [resolvable:$true] %s193_s11 }
  0x2c   : > { %s180_s30 = scalar_lea.sflag [#allocation7], %s720_s25  ;;  %s559_s5 = scalar_lea.hbm %s782_s9, 256 }
  0x2d   : > { %s853_s29 = scalar_select %p773_p6, 1, 0 }
  0x2e   : > { %p560_p10 = scmp.ne.s32.totalorder %s782_s9, %s559_s5  ;;  %s564_s26 = scalar_lea.hbm %s844_s1, 512 }
  0x2f   : > { %p565_p12 = scmp.lt.u32.totalorder %s782_s9, %s844_s1  ;;  %p566_p0 = scmp.lt.u32.totalorder %s564_s26, %s559_s5 }
  0x30   : > { %p562_p11 = pnand %p560_p10, %p531_p13  ;;  %p568_p3 = scmp.lt.u32.totalorder %s559_s5, %s782_s9 }
  0x31   : > { %p567_p2 = por %p566_p0, %p565_p12 }
  0x32   : > { %p563_p8 = pneg %p562_p11 }
  0x33   : > { %p569_p4 = por %p568_p3, %p567_p2 }
  0x35   : > { %p570_p1 = pnand %p569_p4, %p563_p8 }
  0x37   : > { %573 = shalt.err (!%p570_p1)
}
  0x38   : > { %s574_s25 = scalar_lea.vmem %s194_s11, 256  ;;  %s646_s27 = smov [#allocation6]  }
  0x39   : > { %p575_p5 = scmp.ne.s32.totalorder %s194_s11, %s574_s25  ;;  %s579_s21 = sshll.u32 %s646_s27, 4  ;;  %s580_s21 = int_to_ptr.vmem [resolvable:$false] %s579_s21 }
  0x3a   : > { %s581_s22 = scalar_lea.vmem %s580_s21, 512  ;;  %p582_p7 = scmp.lt.s32.totalorder %s194_s11, %s580_s21 }
  0x3b   : > { %p577_p10 = pnand %p575_p5, %p531_p13  ;;  %p583_p6 = scmp.lt.s32.totalorder %s581_s22, %s574_s25 }
  0x3d   : > { %p578_p11 = pneg %p577_p10  ;;  %p584_p0 = por %p583_p6, %p582_p7 }
  0x3f   : > { %p585_p12 = pnand %p584_p0, %p578_p11 }
  0x41   : > { %588 = shalt.err (!%p585_p12)
}
  0x42   : > { %478 = dma.hbm_to_vmem [thread:$0]  (!%p735_p9), %s782_s9, 256, %s194_s11, %s180_s30  }
  0x43   : > { %p854_p8 = scmp.ne.s32.totalorder %s853_s29, 0 }
  0x44   : > { %s204_s28 = sand.u32 (!%p854_p8), 1, %s627_s13   ;;  %p855_p13 = scmp.ne.s32.totalorder (!%p854_p8), %s849_s23, 0 }
  0x45   : > { %202 = sbr.rel (%p854_p8) target bundleno = 236 (0xec), region = 28  ;;  %s458_s4 = sshll.u32 (!%p854_p8), %s204_s28, 4 }
  0x46   : > { %s205_s8 = scalar_lea.sflag (!%p854_p8), [#allocation5], %s204_s28  ;;  %s208_s10 = scalar_lea.vmem (!%p854_p8), [#allocation4], %s458_s4 }
  0x4c   : > { %614 = dma.done.wait (%p855_p13), %s205_s8, 256  }
  0x4d   : > { %616 = vsyncadd (%p855_p13), %s205_s8, 4294967040  ;;  %s214_s5 = scalar_lea.sflag [#allocation7], %s204_s28  ;;  %s217_s7 = scalar_lea.vmem [#allocation6], %s458_s4 }
  0x4e   : > { %618 = dma.done.wait (%p855_p13), %s214_s5, 256  }
  0x4f   : > { %620 = vsyncadd (%p855_p13), %s214_s5, 4294967040  ;;  %v266_v0 = vld [vmem:[%s208_s10] sm:$0xff]  ;;  %v267_v1 = vld [vmem:[%s208_s10 + $0x8] sm:$0xff]  ;;  %v647_v6 = vmov 0.0   ;;  %p250_p7 = scmp.lt.s32.totalorder %s635_s15, 1  ;;  %vm306_vm6 = vcmask 7168  }
  0x50   : > { %v268_v2 = vld [vmem:[%s217_s7] sm:$0xff]  ;;  %v269_v3 = vld [vmem:[%s217_s7 + $0x8] sm:$0xff]  ;;  %vm270_vm0 = vcmp.ge.f32.partialorder %v266_v0, 0.0  ;;  %vm271_vm1 = vcmp.ge.f32.partialorder %v267_v1, 0.0 }
  0x51   : > { %vm272_vm2 = vcmp.ge.f32.partialorder %v268_v2, 0.0  ;;  %v280_v4 = vsub.f32 %v266_v0, %v268_v2  ;;  %vm273_vm3 = vcmp.ge.f32.partialorder %v269_v3, 0.0  ;;  %v281_v5 = vsub.f32 %v267_v1, %v269_v3  ;;  %s864_s15 = smov (!%p250_p7, %s635_s15), 1 }
  0x52   : > { %vm274_vm4 = vmand %vm270_vm0, %vm272_vm2  ;;  %s460_s23 = sshll.u32 %s864_s15, 3 }
  0x53   : > { %vm275_vm5 = vmand %vm271_vm1, %vm273_vm3  ;;  %v462_v7 = vsel %vm274_vm4, 1.0, %v647_v6  ;;  %v284_v8 = vmul.f32 %v280_v4, %v280_v4  ;;  %v285_v10 = vmul.f32 %v281_v5, %v281_v5  ;;  %s253_s9 = scalar_lea.vmem %s845_s2, %s460_s23  ;;  %s257_s12 = scalar_lea.vmem %s846_s3, %s460_s23 }
  0x54   : > { %v463_v9 = vsel %vm275_vm5, 1.0, %v647_v6 }
  0x55   : > { %v286_v11 = vmul.f32 %v462_v7, %v284_v8  ;;  %v287_v12 = vmul.f32 %v463_v9, %v285_v10  ;;  %v310_v14 = vadd.f32 %v463_v9, %v462_v7 }
  0x57   : > { %v303_v13 = vadd.f32 %v287_v12, %v286_v11 }
  0x59   : > { %304 = vadd.xlane.f32.xlu0 %v303_v13 }
  0x5d   : > { %311 = vadd.xlane.f32.xlu0 %v310_v14 }
  0xe6   : > { %v305_v15 = vpop.xlane.xlu0 %304 }
  0xe7   : > { %307 = vst.msk [vmem:[%s253_s9] sm:$0xff] %vm306_vm6, %v305_v15 }
  0xea   : > { %v312_v16 = vpop.xlane.xlu0 %311 }
  0xeb   : > { %313 = vst.msk [vmem:[%s257_s12] sm:$0xff] %vm306_vm6, %v312_v16 }
  0xec PF: > { %s20_s17 = sadd.s32 1, %s643_s17   ;;  %s856_s12 = smov %s627_s13 }
  0xed   : > { %p17_p9 = scmp.ge.s32.totalorder %s20_s17, 4   ;;  %s857_s13 = smov %s631_s14 }
  0xee   : > { %s858_s14 = smov %s717_s24  ;;  %s859_s15 = smov %s639_s16 }
  0xef   : > { %s860_s16 = smov %s862_s19  ;;  %19 = sbr.rel (!%p17_p9) target bundleno = 6 (0x6), region = 101 }
  0xf6   :  { %347 = vsyncpa [#allocation5], 1 }
  0xf7   :  { %349 = vsyncpa [#allocation5 + $0x1], 1 }
  0xf8   :  { %350 = vsyncpa [#allocation7], 1 }
  0xf9   :  { %352 = vsyncpa [#allocation7 + $0x1], 1 }

</bundles_post_ra>
